<compile_context>
chip_gen: v6e
topology: v6e:2x2x1
jax: 0.10.0
libtpu: 0.0.40
codegen_flags: <defaults>
</compile_context>

<pallas_src>
import jax
import jax.numpy as jnp
from jax.experimental import pallas as pl
from jax.experimental.pallas import tpu as pltpu


_MIN = 1e-4
_MAX = 1e4


def _disp_act_kernel(x_ref, o_ref):
    # Compute in f32 regardless of input dtype (exact clamp bounds, v5e has
    # no bf16 VPU/EUP anyway). exp/log1p -> EUP; max/abs/clip -> VPU.
    x = x_ref[...].astype(jnp.float32)
    # Numerically stable softplus, matching torch.nn.functional.softplus:
    #   softplus(x) = max(x, 0) + log1p(exp(-|x|))
    sp = jnp.maximum(x, 0.0) + jnp.log1p(jnp.exp(-jnp.abs(x)))
    o_ref[...] = jnp.clip(sp, _MIN, _MAX).astype(o_ref.dtype)


def _choose_cols(n):
    """Largest lane-dense width (multiple of 128) that divides n exactly."""
    for c in (1024, 896, 768, 640, 512, 384, 256, 128):
        if n % c == 0:
            return c, False
    # No divisor: fall back to 512 lanes with a small (< 512 elem) pad.
    # TODO(synk): a bulk/tail split (pallas on the cols-aligned bulk, XLA on
    # the tail) would avoid the pad/slice HBM passes entirely for odd sizes.
    return 512, True


def disp_act(x, *, target_block_bytes=4 << 20, force_pallas=False):
    """clamp(softplus(x), 1e-4, 1e4) — DispAct forward pass."""
    n = x.size
    # Small-input fast path: a single XLA-fused elementwise op beats the
    # pallas_call launch + reshape plumbing for tiny tensors.
    if n == 0 or (not force_pallas and n < (1 << 16)):
        x32 = x.astype(jnp.float32)
        return jnp.clip(jax.nn.softplus(x32), _MIN, _MAX).astype(x.dtype)

    orig_shape = x.shape
    dtype = x.dtype
    itemsize = jnp.dtype(dtype).itemsize

    cols, needs_pad = _choose_cols(n)

    flat = x.reshape(-1)
    if needs_pad:
        pad = (-n) % cols                    # < cols extra elements
        flat = jnp.pad(flat, (0, pad))       # softplus(0)=ln2, sliced off below
        n_padded = n + pad
    else:
        pad = 0
        n_padded = n

    rows = n_padded // cols                  # exact

    # Byte-budgeted row tile (~target_block_bytes per block), multiple of 8.
    tr = max(8, (target_block_bytes // (cols * itemsize)) // 8 * 8)

    if rows <= tr:
        if rows >= 16:
            # Whole input fits one block: split into 2 steps so both v7x
            # TensorCores get work (harmless on single-TC v5e/v6e).
            tr = -(-(-(-rows // 2)) // 8) * 8   # ceil(rows/2) rounded up to 8
        else:
            tr = rows                           # block == full array rows
    grid = (pl.cdiv(rows, tr),)                 # partial last block is masked

    x2 = flat.reshape(rows, cols)

    # Explicit scoped-VMEM limit: 2 arrays x 2 buffers x block + margin.
    block_bytes = tr * cols * itemsize
    vmem_limit = min(48 << 20, max(16 << 20, 4 * block_bytes + (4 << 20)))

    out = pl.pallas_call(
        _disp_act_kernel,
        out_shape=jax.ShapeDtypeStruct((rows, cols), dtype),
        grid=grid,
        in_specs=[pl.BlockSpec((tr, cols), lambda i: (i, 0))],
        out_specs=pl.BlockSpec((tr, cols), lambda i: (i, 0)),
        compiler_params=pltpu.CompilerParams(
            dimension_semantics=("parallel",),
            vmem_limit_bytes=vmem_limit,
        ),
    )(x2)

    out_flat = out.reshape(-1)
    if pad:
        out_flat = out_flat[:n]
    return out_flat.reshape(orig_shape)


def _ref(x):
    x32 = x.astype(jnp.float32)
    return jnp.clip(jax.nn.softplus(x32), _MIN, _MAX).astype(x.dtype)


if __name__ == "__main__":
    key = jax.random.PRNGKey(0)
    k0, k1, k2, k3 = jax.random.split(key, 4)

    # Small input consistent with the module's typical use (decoder output).
    x_small = jax.random.normal(k0, (2, 4, 16, 16), dtype=jnp.float32) * 5.0

    # Kernel path forced on the small input (exercises pallas_call).
    y_small = jax.block_until_ready(disp_act(x_small, force_pallas=True))
    assert y_small.shape == x_small.shape
    assert jnp.allclose(y_small, _ref(x_small), rtol=1e-6, atol=1e-6)

    # Default (auto) path on the small input — fast path, same semantics.
    y_fast = jax.block_until_ready(disp_act(x_small))
    assert jnp.allclose(y_fast, _ref(x_small), rtol=1e-6, atol=1e-6)

    # Medium input: lane-dense multi-step grid (>=2 steps), no padding.
    x_med = jax.random.normal(k1, (4, 16, 64, 32), dtype=jnp.float32) * 5.0
    y_med = jax.block_until_ready(disp_act(x_med))
    assert y_med.shape == x_med.shape
    assert jnp.allclose(y_med, _ref(x_med), rtol=1e-6, atol=1e-6)

    # bf16 input: compute in f32 inside the kernel, cast at the store.
    x_bf16 = (jax.random.normal(k2, (2, 4, 16, 16), dtype=jnp.float32) * 5.0
              ).astype(jnp.bfloat16)
    y_bf16 = jax.block_until_ready(disp_act(x_bf16, force_pallas=True))
    assert y_bf16.dtype == jnp.bfloat16
    assert jnp.allclose(y_bf16.astype(jnp.float32),
                        _ref(x_bf16).astype(jnp.float32),
                        rtol=1e-2, atol=1e-2)

    # Odd-sized input: exercises the (small) pad path + masked partial block.
    x_odd = jax.random.normal(k3, (3, 5, 7, 11), dtype=jnp.float32) * 5.0
    y_odd = jax.block_until_ready(disp_act(x_odd, force_pallas=True))
    assert y_odd.shape == x_odd.shape
    assert jnp.allclose(y_odd, _ref(x_odd), rtol=1e-6, atol=1e-6)

    print("KERNEL_OK")
</pallas_src>

<mosaic_0001>
module attributes {stable_mosaic.version = 11 : i64} {
  func.func @_disp_act_kernel(%arg0: i32, %arg1: memref<2x1024xf32, #tpu.memory_space<vmem>>, %arg2: memref<2x1024xf32, #tpu.memory_space<vmem>>) attributes {dimension_semantics = [#tpu.dimension_semantics<parallel>], iteration_bounds = array<i64: 1>, scalar_prefetch = 0 : i64, scratch_operands = 0 : i64, tpu.core_type = #tpu.core_type<tc>, window_params = [{transform_indices = @transform_0, window_bounds = array<i64: 2, 1024>}, {transform_indices = @transform_1, window_bounds = array<i64: 2, 1024>}]} {
    %c0 = arith.constant 0 : index
    %c0_0 = arith.constant 0 : index
    %0 = vector.load %arg1[%c0, %c0_0] : memref<2x1024xf32, #tpu.memory_space<vmem>>, vector<2x1024xf32>
    %cst = arith.constant 0.000000e+00 : f32
    %1 = vector.broadcast %cst : f32 to vector<2x1024xf32>
    %2 = arith.maximumf %0, %1 : vector<2x1024xf32>
    %3 = math.absf %0 : vector<2x1024xf32>
    %cst_1 = arith.constant 0.000000e+00 : f32
    %4 = vector.broadcast %cst_1 : f32 to vector<2x1024xf32>
    %5 = arith.subf %4, %3 : vector<2x1024xf32>
    %6 = math.exp %5 : vector<2x1024xf32>
    %7 = math.log1p %6 : vector<2x1024xf32>
    %8 = arith.addf %2, %7 : vector<2x1024xf32>
    %cst_2 = arith.constant 9.99999974E-5 : f32
    %cst_3 = arith.constant 1.000000e+04 : f32
    %9 = vector.broadcast %cst_2 : f32 to vector<2x1024xf32>
    %10 = arith.maximumf %9, %8 : vector<2x1024xf32>
    %11 = vector.broadcast %cst_3 : f32 to vector<2x1024xf32>
    %12 = arith.minimumf %11, %10 : vector<2x1024xf32>
    %c0_4 = arith.constant 0 : index
    %c0_5 = arith.constant 0 : index
    %13 = vector.load %arg2[%c0_4, %c0_5] : memref<2x1024xf32, #tpu.memory_space<vmem>>, vector<2x1024xf32>
    tpu.vector_store %arg2[%c0_4, %c0_5], %12 {strides = array<i32>} : memref<2x1024xf32, #tpu.memory_space<vmem>>, vector<2x1024xf32>,
    return
  }
  func.func @transform_0(%arg0: i32) -> (i32, i32) {
    %c0_i32 = arith.constant 0 : i32
    %c0_i32_0 = arith.constant 0 : i32
    return %arg0, %c0_i32 : i32, i32
  }
  func.func @transform_1(%arg0: i32) -> (i32, i32) {
    %c0_i32 = arith.constant 0 : i32
    %c0_i32_0 = arith.constant 0 : i32
    return %arg0, %c0_i32 : i32, i32
  }
}

</mosaic_0001>

<bundles_post_ra>
// kernel: tpu_custom_call.1
= control target key start
LH: loop header
LB: loop body
LE: loop exit
PB: predicated region body
PF: predicated region fallthrough
CT: control target
= control target key end

     0   :  { %6 = vsyncpa [#allocation3], 0  ;;  %s146_s0 = inlined_call_operand.hbm [shape: f32[2,1024], index: 0, kind: input, shape index: {}]   ;;  %s147_s1 = inlined_call_operand.hbm [shape: f32[2,1024], index: 1, kind: output, shape index: {}]  }
   0x1   :  { %7 = vsyncpa [#allocation4], 0  ;;  %s128_s6 = smov [#allocation2]  }
   0x2   :  { %s14_s7 = sshll.u32 %s128_s6, 4  ;;  %s15_s7 = int_to_ptr.vmem [resolvable:$true] %s14_s7 }
   0x3   :  { %s92_s8 = scalar_lea.vmem %s15_s7, 256  ;;  %p97_p1 = scmp.lt.s32.totalorder %s15_s7, %s15_s7 }
   0x4   :  { %p93_p0 = scmp.ne.s32.totalorder %s15_s7, %s92_s8  ;;  %p98_p2 = scmp.lt.s32.totalorder %s92_s8, %s92_s8 }
   0x6   :  { %p99_p3 = por %p98_p2, %p97_p1 }
   0x8   :  { %p100_p4 = pnand %p99_p3, %p93_p0 }
   0xa   :  { %103 = shalt.err (!%p100_p4)
}
   0xb   :  { %17 = dma.hbm_to_vmem [thread:$0]  %s146_s0, 256, %s15_s7, [#allocation3]  }
   0xc   :  { %124 = dma.done.wait [#allocation3], 256  }
   0xd   :  { %125 = vsyncadd [#allocation3], 4294967040  ;;  %v21_v0 = vld [vmem:[#allocation2] sm:$0xff]  ;;  %v22_v1 = vld [vmem:[#allocation2 + $0x8] sm:$0xff]  ;;  %s129_s0 = smov [#allocation5]  }
   0xe   :  { %v25_v2 = vand.u32 2147483647, %v21_v0  ;;  %v26_v3 = vand.u32 2147483647, %v22_v1  ;;  %v23_v20 = vmax.f32 %v21_v0, 0.0  ;;  %v24_v24 = vmax.f32 %v22_v1, 0.0 }
   0xf   :  { %s65_s11 = sshll.u32 %s129_s0, 4  ;;  %s66_s11 = int_to_ptr.vmem [resolvable:$true] %s65_s11 }
  0x10   :  { %v27_v4 = vsub.f32 0.0, %v25_v2  ;;  %v28_v5 = vsub.f32 0.0, %v26_v3  ;;  %s104_s12 = scalar_lea.vmem %s66_s11, 256  ;;  %p109_p6 = scmp.lt.s32.totalorder %s66_s11, %s66_s11 }
  0x11   :  { %p105_p5 = scmp.ne.s32.totalorder %s66_s11, %s104_s12  ;;  %p110_p7 = scmp.lt.s32.totalorder %s104_s12, %s104_s12 }
  0x12   :  { %v29_v6 = vmul.f32 1.442695, %v27_v4  ;;  %v31_v7 = vmul.f32 1.442695, %v28_v5 }
  0x13   :  { %p111_p8 = por %p110_p7, %p109_p6 }
  0x14   :  { %76 = vpow2.f32 %v29_v6 }
  0x15   :  { %78 = vpow2.f32 %v31_v7  ;;  %p112_p9 = pnand %p111_p8, %p105_p5 }
  0x21   :  { %v77_v8 = vpop.eup %76 }
  0x22   :  { %v79_v9 = vpop.eup %78  ;;  %v33_v10 = vadd.f32 1.0, %v77_v8  ;;  %v36_v12 = vmul.f32 -0.5, %v77_v8  ;;  %v39_v15 = vand.u32 2147483647, %v77_v8 }
  0x23   :  { %v42_v11 = vadd.f32 1.0, %v79_v9  ;;  %v45_v13 = vmul.f32 -0.5, %v79_v9  ;;  %v48_v17 = vand.u32 2147483647, %v79_v9 }
  0x24   :  { %80 = vlog2.f32 %v33_v10  ;;  %v37_v14 = vadd.f32 1.0, %v36_v12  ;;  %vm40_vm0 = vcmp.lt.f32.partialorder %v39_v15, 0.0004427343 }
  0x25   :  { %82 = vlog2.f32 %v42_v11  ;;  %v46_v16 = vadd.f32 1.0, %v45_v13  ;;  %vm49_vm1 = vcmp.lt.f32.partialorder %v48_v17, 0.0004427343 }
  0x26   :  { %v38_v18 = vmul.f32 %v77_v8, %v37_v14 }
  0x27   :  { %v47_v21 = vmul.f32 %v79_v9, %v46_v16 }
  0x31   :  { %v81_v19 = vpop.eup %80 }
  0x32   :  { %v83_v22 = vpop.eup %82  ;;  %v35_v23 = vmul.f32 0.6931472, %v81_v19 }
  0x33   :  { %v44_v25 = vmul.f32 0.6931472, %v83_v22 }
  0x34   :  { %v41_v26 = vsel %vm40_vm0, %v38_v18, %v35_v23 }
  0x35   :  { %v51_v27 = vadd.f32 %v41_v26, %v23_v20  ;;  %v50_v28 = vsel %vm49_vm1, %v47_v21, %v44_v25 }
  0x36   :  { %v52_v29 = vadd.f32 %v50_v28, %v24_v24 }
  0x37   :  { %v53_v30 = vmax.f32 %v51_v27, 0.0001 }
  0x38   :  { %v54_v31 = vmax.f32 %v52_v29, 0.0001 }
  0x39   :  { %v55_v32 = vmin.f32 %v53_v30, 10000.0 }
  0x3a   :  { %v56_v33 = vmin.f32 %v54_v31, 10000.0 }
  0x3b   :  { %57 = vst [vmem:[#allocation5] sm:$0xff] %v55_v32 }
  0x3c   :  { %58 = vst [vmem:[#allocation5 + $0x8] sm:$0xff] %v56_v33 }
  0x3d   :  { %115 = shalt.err (!%p112_p9)
}
  0x3e   :  { %68 = dma.vmem_to_hbm [thread:$0]  %s66_s11, 256, %s147_s1, [#allocation4]  }
  0x3f   :  { %126 = dma.done.wait [#allocation4], 256  }
  0x40   :  { %127 = vsyncadd [#allocation4], 4294967040 }
  0x41   :  { %72 = vsyncpa [#allocation3], 1 }
  0x42   :  { %73 = vsyncpa [#allocation4], 1 }

</bundles_post_ra>
